<compile_context>
chip_gen: v5e
topology: v5e:2x2
jax: 0.10.0
libtpu: 0.0.40
codegen_flags: <defaults>
</compile_context>

<pallas_src>
import math

import jax
import jax.numpy as jnp
from jax import lax
from jax.experimental import pallas as pl
from jax.experimental.pallas import tpu as pltpu


# ---------------------------------------------------------------------------
# Spectral norm sigma via power iteration (PyTorch-style, eps-guarded).
# ---------------------------------------------------------------------------
def _inv_sigma_power_iteration(weight, n_iters=2, eps=1e-12):
    """1 / sigma_max(weight) for a (emb, dim) matrix via power iteration."""
    # TODO(synk): PyTorch's spectral_norm keeps persistent randomly-initialized
    # u/v buffers updated once per *training* forward (frozen in eval); this is
    # stateless, so we run a fixed-init power iteration per call instead.
    w = weight.astype(jnp.float32)
    emb = w.shape[0]
    u = jnp.full((emb,), 1.0 / math.sqrt(emb), jnp.float32)
    v = None
    for _ in range(max(1, n_iters)):
        v = u @ w                                     # (dim,)
        v = v / (jnp.linalg.norm(v) + eps)
        u = w @ v                                     # (emb,)
        u = u / (jnp.linalg.norm(u) + eps)
    sigma = u @ (w @ v)
    return 1.0 / jnp.maximum(sigma, eps)


# ---------------------------------------------------------------------------
# Kernels.  weight stays in its native (emb, dim) layout; contraction is over
# axis 1 of both operands.  1/sigma is an SMEM scalar fused into the epilogue.
# ---------------------------------------------------------------------------
def _sn_linear_full_kernel(scale_ref, x_ref, w_ref, b_ref, o_ref):
    acc = lax.dot_general(
        x_ref[...], w_ref[...],
        dimension_numbers=(((1,), (1,)), ((), ())),
        preferred_element_type=jnp.float32)
    o_ref[...] = (acc * scale_ref[0]
                  + b_ref[...].astype(jnp.float32)).astype(o_ref.dtype)


def _sn_linear_tiled_kernel(scale_ref, x_ref, w_ref, b_ref, o_ref, acc_ref):
    @pl.when(pl.program_id(2) == 0)
    def _():
        acc_ref[...] = jnp.zeros_like(acc_ref)

    acc_ref[...] += lax.dot_general(
        x_ref[...], w_ref[...],
        dimension_numbers=(((1,), (1,)), ((), ())),
        preferred_element_type=jnp.float32)

    @pl.when(pl.program_id(2) == pl.num_programs(2) - 1)
    def _():
        o_ref[...] = (acc_ref[...] * scale_ref[0]
                      + b_ref[...].astype(jnp.float32)).astype(o_ref.dtype)


def _pick_tile(n, pref, align):
    """Largest multiple of `align` <= `pref` that evenly divides n, else None."""
    if n % align != 0:
        return None
    t = min(pref, n)
    t -= t % align
    while n % t != 0:
        t -= align
    return t


# ---------------------------------------------------------------------------
# Wrapper: flatten, power-iteration sigma, single fused pallas_call.
# ---------------------------------------------------------------------------
def sn_linear_block(x, weight, bias, *, n_power_iterations=2, eps=1e-12):
    """y = spectral_norm(Linear(dim, emb))(x.reshape(B, -1)).

    weight: (emb, dim)  (native PyTorch nn.Linear layout), bias: (emb,).
    """
    B = x.shape[0]
    xf = x.reshape(B, -1)                     # x.reshape(x.shape[0], -1)
    D = xf.shape[1]
    emb = weight.shape[0]
    out_dtype = x.dtype

    inv_sigma = _inv_sigma_power_iteration(weight, n_power_iterations, eps)
    inv_sigma = inv_sigma.reshape(1).astype(jnp.float32)     # SMEM scalar
    bias_row = bias.reshape(1, emb)                           # broadcast row

    cost = pl.CostEstimate(
        flops=2 * B * D * emb,
        transcendentals=0,
        bytes_accessed=(B * D + emb * D + B * emb + emb) * xf.dtype.itemsize)

    # Tile sizes: M aligned to 8 sublanes, N/K to 128 lanes; N/K large enough
    # to fill the 256-wide MXU on v6e/v7x while keeping the double-buffered
    # footprint tiny (well under v7x's 32 MiB scoped VMEM default).
    tm = _pick_tile(B, 256, 8)
    tn = _pick_tile(emb, 256, 128)
    tk = _pick_tile(D, 512, 128)

    if tm is not None and tn is not None and tk is not None:
        # Tiled (M, N, K) grid: VMEM f32 accumulator, pl.when init/finalize,
        # parallel M/N axes (shards across v7x's two TensorCores).
        grid = (B // tm, emb // tn, D // tk)
        return pl.pallas_call(
            _sn_linear_tiled_kernel,
            out_shape=jax.ShapeDtypeStruct((B, emb), out_dtype),
            grid=grid,
            in_specs=[
                pl.BlockSpec(memory_space=pltpu.MemorySpace.SMEM),   # 1/sigma
                pl.BlockSpec((tm, tk), lambda i, j, k: (i, k)),      # x tile
                pl.BlockSpec((tn, tk), lambda i, j, k: (j, k)),      # W tile (native layout)
                pl.BlockSpec((1, tn), lambda i, j, k: (0, j)),       # bias tile
            ],
            out_specs=pl.BlockSpec((tm, tn), lambda i, j, k: (i, j)),
            scratch_shapes=[pltpu.VMEM((tm, tn), jnp.float32)],
            compiler_params=pltpu.CompilerParams(
                dimension_semantics=("parallel", "parallel", "arbitrary")),
            cost_estimate=cost,
        )(inv_sigma, xf, weight, bias_row)

    # Fallback for small / misaligned shapes (e.g. the toy test): one grid-less
    # block — whole operands resident in VMEM, no pointless double-buffering.
    full_bytes = (B * D + emb * D + B * emb + emb) * 4
    extra = {}
    if full_bytes > (12 << 20):
        # Mid-sized full blocks can exceed v5e's 16 MiB scoped VMEM default.
        extra["compiler_params"] = pltpu.CompilerParams(
            vmem_limit_bytes=int(min(100 << 20, 2 * full_bytes + (4 << 20))))
    return pl.pallas_call(
        _sn_linear_full_kernel,
        out_shape=jax.ShapeDtypeStruct((B, emb), out_dtype),
        in_specs=[
            pl.BlockSpec(memory_space=pltpu.MemorySpace.SMEM),   # 1/sigma scalar
            pl.BlockSpec(memory_space=pltpu.MemorySpace.VMEM),   # x (B, D) unpadded
            pl.BlockSpec(memory_space=pltpu.MemorySpace.VMEM),   # weight (emb, D) native
            pl.BlockSpec(memory_space=pltpu.MemorySpace.VMEM),   # bias (1, emb)
        ],
        out_specs=pl.BlockSpec(memory_space=pltpu.MemorySpace.VMEM),
        cost_estimate=cost,
        **extra,
    )(inv_sigma, xf, weight, bias_row)


# ---------------------------------------------------------------------------
if __name__ == "__main__":
    key = jax.random.PRNGKey(0)
    k1, k2, k3, k4, k5, k6 = jax.random.split(key, 6)
    fwd = jax.jit(sn_linear_block)

    # --- Toy shape consistent with the module (misaligned -> full-block path)
    B, C, S = 2, 4, 16
    dim, emb = C * S, 32
    x = jax.random.normal(k1, (B, C, S), jnp.float32)
    bound = 1.0 / math.sqrt(dim)                         # nn.Linear default init
    weight = jax.random.uniform(k2, (emb, dim), jnp.float32, -bound, bound)
    bias = jax.random.uniform(k3, (emb,), jnp.float32, -bound, bound)

    y = jax.block_until_ready(fwd(x, weight, bias))

    inv_s = _inv_sigma_power_iteration(weight)
    ref = x.reshape(B, -1) @ (weight * inv_s).T + bias
    assert y.shape == (B, emb), y.shape
    assert bool(jnp.all(jnp.isfinite(y)))
    assert bool(jnp.allclose(y, ref, atol=1e-5, rtol=1e-5)), \
        float(jnp.max(jnp.abs(y - ref)))

    # --- Aligned shape (exercises the tiled (M, N, K) grid path) ------------
    B2, C2, S2, emb2 = 8, 8, 128, 512
    dim2 = C2 * S2
    x2 = jax.random.normal(k4, (B2, C2, S2), jnp.float32)
    bound2 = 1.0 / math.sqrt(dim2)
    weight2 = jax.random.uniform(k5, (emb2, dim2), jnp.float32, -bound2, bound2)
    bias2 = jax.random.uniform(k6, (emb2,), jnp.float32, -bound2, bound2)

    y2 = jax.block_until_ready(fwd(x2, weight2, bias2))

    inv_s2 = _inv_sigma_power_iteration(weight2)
    ref2 = x2.reshape(B2, -1) @ (weight2 * inv_s2).T + bias2
    assert y2.shape == (B2, emb2), y2.shape
    assert bool(jnp.all(jnp.isfinite(y2)))
    assert bool(jnp.allclose(y2, ref2, atol=2e-4, rtol=2e-4)), \
        float(jnp.max(jnp.abs(y2 - ref2)))

    print("KERNEL_OK")
</pallas_src>

<mosaic_0001>
module attributes {stable_mosaic.version = 11 : i64} {
  func.func @_sn_linear_full_kernel(%arg0: memref<1xf32, #tpu.memory_space<smem>>, %arg1: memref<2x64xf32, #tpu.memory_space<vmem>>, %arg2: memref<32x64xf32, #tpu.memory_space<vmem>>, %arg3: memref<1x32xf32, #tpu.memory_space<vmem>>, %arg4: memref<2x32xf32, #tpu.memory_space<vmem>>) attributes {dimension_semantics = [], scalar_prefetch = 0 : i64, scratch_operands = 0 : i64, tpu.core_type = #tpu.core_type<tc>} {
    %c0 = arith.constant 0 : index
    %c0_0 = arith.constant 0 : index
    %0 = vector.load %arg1[%c0, %c0_0] : memref<2x64xf32, #tpu.memory_space<vmem>>, vector<2x64xf32>
    %c0_1 = arith.constant 0 : index
    %c0_2 = arith.constant 0 : index
    %1 = vector.load %arg2[%c0_1, %c0_2] : memref<32x64xf32, #tpu.memory_space<vmem>>, vector<32x64xf32>
    %cst = arith.constant dense<0.000000e+00> : vector<2x32xf32>
    %2 = tpu.matmul %0, %1, %cst {dimension_numbers = #tpu.dot_dimension_numbers<[1], [1], [0], [0], [0, 0, 1, 0], [], []>} : vector<2x64xf32>, vector<32x64xf32>, vector<2x32xf32> -> vector<2x32xf32>
    %c0_3 = arith.constant 0 : index
    %3 = memref.load %arg0[%c0_3] : memref<1xf32, #tpu.memory_space<smem>>
    %4 = vector.broadcast %3 : f32 to vector<2x32xf32>
    %5 = arith.mulf %2, %4 : vector<2x32xf32>
    %c0_4 = arith.constant 0 : index
    %c0_5 = arith.constant 0 : index
    %6 = vector.load %arg3[%c0_4, %c0_5] : memref<1x32xf32, #tpu.memory_space<vmem>>, vector<1x32xf32>
    %7 = vector.broadcast %6 : vector<1x32xf32> to vector<2x32xf32>
    %8 = arith.addf %5, %7 : vector<2x32xf32>
    %c0_6 = arith.constant 0 : index
    %c0_7 = arith.constant 0 : index
    %9 = vector.load %arg4[%c0_6, %c0_7] : memref<2x32xf32, #tpu.memory_space<vmem>>, vector<2x32xf32>
    tpu.vector_store %arg4[%c0_6, %c0_7], %8 {strides = array<i32>} : memref<2x32xf32, #tpu.memory_space<vmem>>, vector<2x32xf32>,
    return
  }
}

</mosaic_0001>

<bundles_post_ra>
// kernel: sn_linear_block.1
= control target key start
LH: loop header
LB: loop body
LE: loop exit
PB: predicated region body
PF: predicated region fallthrough
CT: control target
= control target key end

     0   :  { %vm24_vm0 = vcmask 523264   ;;  %s169_s0 = inlined_call_operand.<no memory space> [shape: f32[1], index: 0, kind: input, shape index: {}]   ;;  %s170_s1 = inlined_call_operand.vmem [shape: f32[2,64], index: 1, kind: input, shape index: {}]   ;;  %s171_s2 = inlined_call_operand.vmem [shape: f32[32,64], index: 2, kind: input, shape index: {}]   ;;  %s172_s3 = inlined_call_operand.vmem [shape: f32[1,32], index: 3, kind: input, shape index: {}]   ;;  %s173_s4 = inlined_call_operand.hbm [shape: f32[2,32], index: 4, kind: output, shape index: {}]  }
   0x1   :  { %v23_v0 = vld [vmem:[%s171_s2 + $0x18] sm:$0xff]  ;;  %v22_v1 = vld [vmem:[%s171_s2 + $0x10] sm:$0xff] }
   0x2   :  { %86 = vmatpush.xpose.msk.msra.mxu0 %vm24_vm0, %v23_v0 }
   0x3   :  { %10 = vsyncpa [#allocation4], 0  ;;  %v21_v2 = vld [vmem:[%s171_s2 + $0x8] sm:$0xff]  ;;  %v20_v3 = vld [vmem:[%s171_s2] sm:$0xff]  ;;  %v61_v5 = vstv %s169_s0  ;;  %s119_s29 = smov [#allocation3]   ;;  %s77_s2 = sshll.u32 %s173_s4, 4  ;;  %s78_s2 = int_to_ptr.hbm [resolvable:$true] %s77_s2 }
   0x4   :  { %v19_v4 = vld [vmem:[%s170_s1] sm:$0x3]  ;;  %s75_s30 = sshll.u32 %s119_s29, 4  ;;  %vm68_vm1 = vcmask 254976   ;;  %s76_s30 = int_to_ptr.vmem [resolvable:$true] %s75_s30 }
   0x5   :  { %v92_v6 = vld [vmem:[%s172_s3] ss:$0 sm:$0xff] }
   0x6   :  { %87 = vmatpush.xpose.msk.msra.mxu0 %vm24_vm0, %v22_v1 }
   0xa   :  { %88 = vmatpush.xpose.msk.msra.mxu0 %vm24_vm0, %v21_v2 }
   0xe   :  { %89 = vmatpush.xpose.msk.msra.mxu0 %vm24_vm0, %v20_v3 }
  0x11   :  { %90 = vmatmul.msk.f32.vlgmr.msra.gmra.mxu0 %vm24_vm0, %v19_v4 }
  0x8e   :  { %v57_v7 = vpop.f32.mrf.mxu0 }
  0x8f   :  { %v62_v8 = vmul.f32 %v61_v5, %v57_v7 }
  0x91   :  { %v67_v9 = vadd.f32 %v92_v6, %v62_v8 }
  0x93   :  { %69 = vst.msk [vmem:[#allocation3] sm:$0x3] %vm68_vm1, %v67_v9 }
  0x94   :  { %80 = dma.vmem_to_hbm [thread:$0]  %s76_s30, 32, %s78_s2, [#allocation4]  }
  0x95   :  { %117 = dma.done.wait [#allocation4], 32  }
  0x96   :  { %118 = vsyncadd [#allocation4], 4294967264 }
  0x97   :  { %85 = vsyncpa [#allocation4], 1 }

</bundles_post_ra>
